<compile_context>
chip_gen: v5e
topology: v5e:2x2
jax: 0.10.0
libtpu: 0.0.40
codegen_flags: <defaults>
</compile_context>

<pallas_src>
import math
from functools import partial

import jax
import jax.numpy as jnp
from jax.experimental import pallas as pl
from jax.experimental.pallas import tpu as pltpu


_VMEM_LIMIT = 48 * 1024 * 1024   # <= v7x 64 MiB VMEM; plenty on v5e/v6e
_SEQ_ALIGN = 128


# ----------------------------------------------------------------------------
# ALiBi slopes (numerically identical to the PyTorch _get_alibi_slopes)
# ----------------------------------------------------------------------------
def get_alibi_slopes(total_num_heads: int) -> jnp.ndarray:
    closest_power_of_2 = 2 ** math.floor(math.log2(total_num_heads))
    base = 2.0 ** (-(2.0 ** (-(math.log2(closest_power_of_2) - 3))))
    powers = jnp.arange(1, 1 + closest_power_of_2, dtype=jnp.float32)
    slopes = jnp.power(jnp.float32(base), powers)
    if closest_power_of_2 != total_num_heads:
        extra_base = 2.0 ** (-(2.0 ** (-(math.log2(2 * closest_power_of_2) - 3))))
        num_remaining = min(closest_power_of_2, total_num_heads - closest_power_of_2)
        extra_powers = jnp.arange(1, 1 + 2 * num_remaining, 2, dtype=jnp.float32)
        slopes = jnp.concatenate(
            [slopes, jnp.power(jnp.float32(extra_base), extra_powers)])
    return slopes.astype(jnp.float32)


def _pick_tile(dim: int, candidates) -> int:
    """First candidate tile that divides `dim`, else the full dim."""
    for c in candidates:
        if dim % c == 0:
            return c
    return dim


# ----------------------------------------------------------------------------
# Tiled linear kernel: out = x @ w_t   (nn.Linear(bias=False), weight
# pre-transposed once at init so the kernel uses the canonical contraction).
# ----------------------------------------------------------------------------
def _linear_kernel(x_ref, w_ref, o_ref, acc_ref):
    @pl.when(pl.program_id(2) == 0)
    def _():
        acc_ref[...] = jnp.zeros_like(acc_ref)

    acc_ref[...] += jnp.dot(x_ref[...], w_ref[...],
                            preferred_element_type=jnp.float32)

    @pl.when(pl.program_id(2) == pl.num_programs(2) - 1)
    def _():
        o_ref[...] = acc_ref[...].astype(o_ref.dtype)


def pallas_linear(x: jnp.ndarray, w_t: jnp.ndarray):
    """x: [S, I], w_t: [I, O] (already transposed) -> [S, O]."""
    S, I = x.shape
    I2, O = w_t.shape
    assert I == I2
    tm = _pick_tile(S, (512, 256, 128))
    tn = _pick_tile(O, (256, 128))
    tk = _pick_tile(I, (512, 256, 128))
    grid = (S // tm, O // tn, I // tk)

    return pl.pallas_call(
        _linear_kernel,
        out_shape=jax.ShapeDtypeStruct((S, O), x.dtype),
        grid_spec=pltpu.PrefetchScalarGridSpec(
            num_scalar_prefetch=0,
            grid=grid,
            in_specs=[
                pl.BlockSpec((tm, tk), lambda i, j, k: (i, k)),
                pl.BlockSpec((tk, tn), lambda i, j, k: (k, j)),
            ],
            out_specs=pl.BlockSpec((tm, tn), lambda i, j, k: (i, j)),
            scratch_shapes=[pltpu.VMEM((tm, tn), jnp.float32)],
        ),
        compiler_params=pltpu.CompilerParams(
            dimension_semantics=("parallel", "parallel", "arbitrary"),
            vmem_limit_bytes=_VMEM_LIMIT),
    )(x, w_t)


# ----------------------------------------------------------------------------
# RoPE pre-pass: rotate the q and k head blocks of the packed QKV buffer.
# grid = (seq_tiles, heads); outputs q_rot, k_rot as [S, H*D] (lane-dense D).
# ----------------------------------------------------------------------------
def _rope_kernel(q_ref, k_ref, cos_ref, sin_ref, oq_ref, ok_ref, *, half):
    cos = cos_ref[...]
    sin = sin_ref[...]
    q = q_ref[...].astype(jnp.float32)
    k = k_ref[...].astype(jnp.float32)
    oq_ref[...] = (q * cos + pltpu.roll(q, half, axis=1) * sin).astype(oq_ref.dtype)
    ok_ref[...] = (k * cos + pltpu.roll(k, half, axis=1) * sin).astype(ok_ref.dtype)


def pallas_rope_qk(qkv, cos, sin, *, num_heads, head_dim):
    """qkv: [S, 3*H*D]; cos/sin: [S, D] -> (q_rot [S, H*D], k_rot [S, H*D])."""
    S = qkv.shape[0]
    H, D = num_heads, head_dim
    ts = _pick_tile(S, (512, 256, 128))
    grid = (S // ts, H)

    q_spec = pl.BlockSpec((ts, D), lambda s, h: (s, h))
    k_spec = pl.BlockSpec((ts, D), lambda s, h, H=H: (s, H + h))
    cs_spec = pl.BlockSpec((ts, D), lambda s, h: (s, 0))
    out_spec = pl.BlockSpec((ts, D), lambda s, h: (s, h))

    return pl.pallas_call(
        partial(_rope_kernel, half=D // 2),
        out_shape=(jax.ShapeDtypeStruct((S, H * D), qkv.dtype),
                   jax.ShapeDtypeStruct((S, H * D), qkv.dtype)),
        grid_spec=pltpu.PrefetchScalarGridSpec(
            num_scalar_prefetch=0,
            grid=grid,
            in_specs=[q_spec, k_spec, cs_spec, cs_spec],
            out_specs=[out_spec, out_spec]),
        compiler_params=pltpu.CompilerParams(
            dimension_semantics=("parallel", "parallel"),
            vmem_limit_bytes=_VMEM_LIMIT),
    )(qkv, qkv, cos, sin)


# ----------------------------------------------------------------------------
# Flash-style causal attention. grid = (heads, q_tiles, kv_tiles).
# q/k/v BlockSpecs index head-column blocks of their source buffers; the K/V
# kv-index is clamped so causally-dead tiles are never DMA'd.
# ----------------------------------------------------------------------------
def _flash_attn_kernel(*refs, scale, use_alibi, tq, tk):
    if use_alibi:
        slopes_ref, q_ref, k_ref, v_ref, o_ref, m_sc, l_sc, acc_sc = refs
    else:
        q_ref, k_ref, v_ref, o_ref, m_sc, l_sc, acc_sc = refs
        slopes_ref = None

    h = pl.program_id(0)
    qi = pl.program_id(1)
    ki = pl.program_id(2)

    @pl.when(ki == 0)
    def _():
        m_sc[...] = jnp.full_like(m_sc, -jnp.inf)
        l_sc[...] = jnp.zeros_like(l_sc)
        acc_sc[...] = jnp.zeros_like(acc_sc)

    q_start = qi * tq
    k_start = ki * tk
    not_skipped = k_start <= q_start + (tq - 1)          # tile intersects triangle
    needs_mask = (k_start + (tk - 1)) > q_start          # tile crosses the diagonal

    def update(s):
        m_prev = m_sc[...]
        m_new = jnp.maximum(m_prev, jnp.max(s, axis=-1, keepdims=True))
        alpha = jnp.exp(m_prev - m_new)
        p = jnp.exp(s - m_new)
        l_sc[...] = alpha * l_sc[...] + jnp.sum(p, axis=-1, keepdims=True)
        acc_sc[...] = alpha * acc_sc[...] + jnp.dot(
            p.astype(v_ref.dtype), v_ref[...],
            preferred_element_type=jnp.float32)
        m_sc[...] = m_new

    @pl.when(not_skipped)
    def _compute():
        # QK^T in the storage dtype (bf16-ready), f32 accumulation on MXU.
        s = jax.lax.dot_general(
            q_ref[...], k_ref[...],
            dimension_numbers=(((1,), (1,)), ((), ())),
            preferred_element_type=jnp.float32) * scale              # [tq, tk]

        if use_alibi:
            row = q_start + jax.lax.broadcasted_iota(jnp.int32, (tq, tk), 0)
            col = k_start + jax.lax.broadcasted_iota(jnp.int32, (tq, tk), 1)
            s = s + slopes_ref[h] * (col - row).astype(jnp.float32)

        @pl.when(needs_mask)
        def _masked():
            if use_alibi:
                mask = col <= row
            else:
                r = q_start + jax.lax.broadcasted_iota(jnp.int32, (tq, tk), 0)
                c = k_start + jax.lax.broadcasted_iota(jnp.int32, (tq, tk), 1)
                mask = c <= r
            update(jnp.where(mask, s, jnp.float32(-1e30)))

        @pl.when(jnp.logical_not(needs_mask))
        def _unmasked():
            update(s)

    @pl.when(ki == pl.num_programs(2) - 1)
    def _finalize():
        inv_l = pl.reciprocal(l_sc[...], approx=True)                # EUP slot
        o_ref[...] = (acc_sc[...] * inv_l).astype(o_ref.dtype)


def pallas_attention(q_buf, k_buf, v_buf, slopes, *, num_heads, head_dim,
                     scale, use_alibi, q_off, k_off, v_off):
    """q/k/v head blocks live at column blocks (x_off + h) of their buffers.
    Returns attention output as [S, H*D]."""
    S = q_buf.shape[0]
    H, D = num_heads, head_dim
    tq = 128
    tk = _pick_tile(S, (256, 128))
    n_q, n_k = S // tq, S // tk

    kernel = partial(_flash_attn_kernel, scale=scale, use_alibi=use_alibi,
                     tq=tq, tk=tk)

    q_spec = pl.BlockSpec((tq, D), lambda h, qi, ki, off=q_off: (qi, off + h))

    def kv_map(h, qi, ki, off):
        # Clamp to the last kv tile intersecting the causal triangle so that
        # fully-masked tiles map to an already-resident block (DMA elided).
        max_ki = (qi * tq + tq - 1) // tk
        return (jnp.minimum(ki, max_ki), off + h)

    k_spec = pl.BlockSpec((tk, D), lambda h, qi, ki, off=k_off: kv_map(h, qi, ki, off))
    v_spec = pl.BlockSpec((tk, D), lambda h, qi, ki, off=v_off: kv_map(h, qi, ki, off))
    out_spec = pl.BlockSpec((tq, D), lambda h, qi, ki: (qi, h))

    scratch = [pltpu.VMEM((tq, 1), jnp.float32),    # running max m
               pltpu.VMEM((tq, 1), jnp.float32),    # running sum l
               pltpu.VMEM((tq, D), jnp.float32)]    # accumulator

    if use_alibi:
        slope_spec = pl.BlockSpec(memory_space=pltpu.MemorySpace.SMEM)
        in_specs = [slope_spec, q_spec, k_spec, v_spec]
        inputs = (slopes, q_buf, k_buf, v_buf)
    else:
        in_specs = [q_spec, k_spec, v_spec]
        inputs = (q_buf, k_buf, v_buf)

    return pl.pallas_call(
        kernel,
        out_shape=jax.ShapeDtypeStruct((S, H * D), q_buf.dtype),
        grid_spec=pltpu.PrefetchScalarGridSpec(
            num_scalar_prefetch=0,
            grid=(H, n_q, n_k),
            in_specs=in_specs,
            out_specs=out_spec,
            scratch_shapes=scratch),
        compiler_params=pltpu.CompilerParams(
            dimension_semantics=("parallel", "parallel", "arbitrary"),
            vmem_limit_bytes=_VMEM_LIMIT),
    )(*inputs)


# ----------------------------------------------------------------------------
# BaichuanAttention module (JAX/Pallas version)
# ----------------------------------------------------------------------------
class BaichuanAttentionPallas:
    def __init__(self, hidden_size, num_heads, position_embedding,
                 rope_theta=10000.0, max_position_embeddings=8192,
                 key=jax.random.PRNGKey(0), param_dtype=jnp.float32):
        assert hidden_size % num_heads == 0
        self.hidden_size = hidden_size
        self.num_heads = num_heads
        self.head_dim = hidden_size // num_heads
        assert self.head_dim % 128 == 0, "head_dim must be a multiple of 128 (lane dim)"
        self.position_embedding = position_embedding
        self.rope_theta = float(rope_theta)
        self.max_position_embeddings = max_position_embeddings
        self.scaling = self.head_dim ** (-0.5)

        k1, k2 = jax.random.split(key)
        # PyTorch shapes: W_pack [3*hidden, hidden], o_proj [hidden, hidden].
        # Weights are constants, so transpose ONCE at init -> canonical [I, O]
        # contraction in the kernel (no per-tile RHS relayout).
        w_pack = (jax.random.normal(k1, (3 * hidden_size, hidden_size), jnp.float32)
                  * (1.0 / math.sqrt(hidden_size)))
        o_proj = (jax.random.normal(k2, (hidden_size, hidden_size), jnp.float32)
                  * (1.0 / math.sqrt(hidden_size)))
        self.W_pack_t = jnp.asarray(w_pack.T).astype(param_dtype)   # [hidden, 3*hidden]
        self.o_proj_t = jnp.asarray(o_proj.T).astype(param_dtype)   # [hidden, hidden]

        if position_embedding == 'ALIBI':
            self.alibi_slopes = get_alibi_slopes(num_heads)
            self.cos_table = None
            self.sin_table = None
        else:
            self.alibi_slopes = None
            # Precompute full-D cos / signed-sin tables once (NeoX rotary via
            # lane-roll by D/2): rotated = x*cos_full + roll(x, D/2)*sin_signed.
            D = self.head_dim
            inv_freq = 1.0 / (self.rope_theta
                              ** (jnp.arange(0, D, 2, dtype=jnp.float32) / D))
            t = jnp.arange(max_position_embeddings, dtype=jnp.float32)
            freqs = t[:, None] * inv_freq[None, :]                   # [P, D/2]
            cos, sin = jnp.cos(freqs), jnp.sin(freqs)
            self.cos_table = jnp.concatenate([cos, cos], axis=-1)    # [P, D]
            self.sin_table = jnp.concatenate([-sin, sin], axis=-1)   # [P, D]

    def __call__(self, positions, hidden_states):
        S = hidden_states.shape[0]
        H, D = self.num_heads, self.head_dim

        # Pad sequence to a multiple of 128 (padding is causally inert; padded
        # rows produce finite junk that is sliced off at the end).
        S_pad = ((S + _SEQ_ALIGN - 1) // _SEQ_ALIGN) * _SEQ_ALIGN
        if S_pad != S:
            hidden_states = jnp.pad(hidden_states, ((0, S_pad - S), (0, 0)))
            positions = jnp.pad(positions, (0, S_pad - S))

        # QKV projection -> packed [S, 3*hidden] (q | k | v); no host head splits.
        qkv = pallas_linear(hidden_states, self.W_pack_t)

        if self.position_embedding == 'ALIBI':
            attn_out = pallas_attention(
                qkv, qkv, qkv, self.alibi_slopes,
                num_heads=H, head_dim=D, scale=self.scaling,
                use_alibi=True, q_off=0, k_off=H, v_off=2 * H)
        else:
            cos = jnp.take(self.cos_table, positions, axis=0)        # [S_pad, D]
            sin = jnp.take(self.sin_table, positions, axis=0)
            q_rot, k_rot = pallas_rope_qk(qkv, cos, sin,
                                          num_heads=H, head_dim=D)
            attn_out = pallas_attention(
                q_rot, k_rot, qkv, None,
                num_heads=H, head_dim=D, scale=self.scaling,
                use_alibi=False, q_off=0, k_off=0, v_off=2 * H)

        out = pallas_linear(attn_out, self.o_proj_t)                 # [S_pad, hidden]
        return out[:S] if S_pad != S else out


# ----------------------------------------------------------------------------
# Pure-JAX reference for verification
# ----------------------------------------------------------------------------
def reference_forward(module, positions, hidden_states):
    S = hidden_states.shape[0]
    H, D = module.num_heads, module.head_dim
    x = hidden_states.astype(jnp.float32)
    w_pack_t = module.W_pack_t.astype(jnp.float32)
    o_proj_t = module.o_proj_t.astype(jnp.float32)

    qkv = x @ w_pack_t
    q, k, v = jnp.split(qkv, 3, axis=-1)
    q = jnp.transpose(q.reshape(S, H, D), (1, 0, 2))
    k = jnp.transpose(k.reshape(S, H, D), (1, 0, 2))
    v = jnp.transpose(v.reshape(S, H, D), (1, 0, 2))

    use_rope = module.position_embedding != 'ALIBI'
    if use_rope:
        inv_freq = 1.0 / (module.rope_theta
                          ** (jnp.arange(0, D, 2, dtype=jnp.float32) / D))
        freqs = positions.astype(jnp.float32)[:, None] * inv_freq[None, :]
        cos, sin = jnp.cos(freqs), jnp.sin(freqs)

        def rot(t):
            t1, t2 = t[..., : D // 2], t[..., D // 2:]
            return jnp.concatenate([t1 * cos - t2 * sin, t2 * cos + t1 * sin], axis=-1)

        q, k = rot(q), rot(k)

    s = jnp.einsum('hqd,hkd->hqk', q, k) * module.scaling
    row = jnp.arange(S)[:, None]
    col = jnp.arange(S)[None, :]
    if not use_rope:
        s = s + module.alibi_slopes[:, None, None] * (col - row).astype(jnp.float32)[None]
    s = jnp.where((col <= row)[None], s, -1e30)
    s = s - jnp.max(s, axis=-1, keepdims=True)
    p = jnp.exp(s)
    p = p / jnp.sum(p, axis=-1, keepdims=True)
    o = jnp.einsum('hqk,hkd->hqd', p, v)
    o = jnp.transpose(o, (1, 0, 2)).reshape(S, H * D)
    return o @ o_proj_t


# ----------------------------------------------------------------------------
if __name__ == "__main__":
    hidden_size = 256
    num_heads = 2         # head_dim = 128 (lane-dense)

    key = jax.random.PRNGKey(0)
    k_x, k_w = jax.random.split(key)

    ok = True
    # (position embedding, sequence length) — S=200 exercises the pad path.
    for pos_emb, seq_len in (("ROPE", 256), ("ALIBI", 256), ("ROPE", 200)):
        hidden_states = jax.random.normal(k_x, (seq_len, hidden_size), jnp.float32)
        positions = jnp.arange(seq_len, dtype=jnp.int32)
        module = BaichuanAttentionPallas(hidden_size, num_heads, pos_emb, key=k_w)
        out = jax.block_until_ready(module(positions, hidden_states))
        ref = reference_forward(module, positions, hidden_states)
        err = float(jnp.max(jnp.abs(out - ref)))
        tol = 1e-2 * max(1.0, float(jnp.max(jnp.abs(ref))))
        if not (err < tol):
            ok = False
            print(f"MISMATCH ({pos_emb}, S={seq_len}): max abs err = {err} (tol {tol})")

    # bf16 smoke run (full-rate MXU path): check it runs and stays finite.
    seq_len = 256
    hidden_states = jax.random.normal(k_x, (seq_len, hidden_size), jnp.float32)
    positions = jnp.arange(seq_len, dtype=jnp.int32)
    module_bf16 = BaichuanAttentionPallas(hidden_size, num_heads, "ROPE",
                                          key=k_w, param_dtype=jnp.bfloat16)
    out_bf16 = jax.block_until_ready(
        module_bf16(positions, hidden_states.astype(jnp.bfloat16)))
    if not bool(jnp.all(jnp.isfinite(out_bf16.astype(jnp.float32)))):
        ok = False
        print("MISMATCH (bf16): non-finite values in output")

    if ok:
        print("KERNEL_OK")
</pallas_src>

<mosaic_0001>
module attributes {stable_mosaic.version = 11 : i64} {
  func.func @_linear_kernel(%arg0: i32, %arg1: i32, %arg2: i32, %arg3: memref<256x256xf32, #tpu.memory_space<vmem>>, %arg4: memref<256x256xf32, #tpu.memory_space<vmem>>, %arg5: memref<256x256xf32, #tpu.memory_space<vmem>>, %arg6: memref<256x256xf32, #tpu.memory_space<vmem>>) attributes {dimension_semantics = [#tpu.dimension_semantics<parallel>, #tpu.dimension_semantics<parallel>, #tpu.dimension_semantics<arbitrary>], iteration_bounds = array<i64: 1, 3, 1>, scalar_prefetch = 0 : i64, scratch_operands = 1 : i64, tpu.core_type = #tpu.core_type<tc>, window_params = [{transform_indices = @transform_0, window_bounds = array<i64: 256, 256>}, {transform_indices = @transform_1, window_bounds = array<i64: 256, 256>}, {transform_indices = @transform_2, window_bounds = array<i64: 256, 256>}]} {
    %c0_i32 = arith.constant 0 : i32
    %0 = arith.cmpi eq, %arg2, %c0_i32 : i32
    %1 = arith.extui %0 : i1 to i32
    %c0_i32_0 = arith.constant 0 : i32
    %2 = arith.cmpi ne, %1, %c0_i32_0 : i32
    scf.if %2 {
      %cst_10 = arith.constant 0.000000e+00 : f32
      %12 = vector.broadcast %cst_10 : f32 to vector<256x256xf32>
      %c0_11 = arith.constant 0 : index
      %c0_12 = arith.constant 0 : index
      %13 = vector.load %arg6[%c0_11, %c0_12] : memref<256x256xf32, #tpu.memory_space<vmem>>, vector<256x256xf32>
      tpu.vector_store %arg6[%c0_11, %c0_12], %12 {strides = array<i32>} : memref<256x256xf32, #tpu.memory_space<vmem>>, vector<256x256xf32>,
    } else {
    }
    %c0 = arith.constant 0 : index
    %c0_1 = arith.constant 0 : index
    %3 = vector.load %arg6[%c0, %c0_1] : memref<256x256xf32, #tpu.memory_space<vmem>>, vector<256x256xf32>
    %c0_2 = arith.constant 0 : index
    %c0_3 = arith.constant 0 : index
    %4 = vector.load %arg3[%c0_2, %c0_3] : memref<256x256xf32, #tpu.memory_space<vmem>>, vector<256x256xf32>
    %c0_4 = arith.constant 0 : index
    %c0_5 = arith.constant 0 : index
    %5 = vector.load %arg4[%c0_4, %c0_5] : memref<256x256xf32, #tpu.memory_space<vmem>>, vector<256x256xf32>
    %cst = arith.constant dense<0.000000e+00> : vector<256x256xf32>
    %6 = tpu.matmul %4, %5, %cst {dimension_numbers = #tpu.dot_dimension_numbers<[1], [0], [0], [1], [0, 0, 1, 1], [], []>} : vector<256x256xf32>, vector<256x256xf32>, vector<256x256xf32> -> vector<256x256xf32>
    %7 = arith.addf %3, %6 : vector<256x256xf32>
    %c0_6 = arith.constant 0 : index
    %c0_7 = arith.constant 0 : index
    %8 = vector.load %arg6[%c0_6, %c0_7] : memref<256x256xf32, #tpu.memory_space<vmem>>, vector<256x256xf32>
    tpu.vector_store %arg6[%c0_6, %c0_7], %7 {strides = array<i32>} : memref<256x256xf32, #tpu.memory_space<vmem>>, vector<256x256xf32>,
    %c0_i32_8 = arith.constant 0 : i32
    %9 = arith.cmpi eq, %arg2, %c0_i32_8 : i32
    %10 = arith.extui %9 : i1 to i32
    %c0_i32_9 = arith.constant 0 : i32
    %11 = arith.cmpi ne, %10, %c0_i32_9 : i32
    scf.if %11 {
      %c0_10 = arith.constant 0 : index
      %c0_11 = arith.constant 0 : index
      %12 = vector.load %arg6[%c0_10, %c0_11] : memref<256x256xf32, #tpu.memory_space<vmem>>, vector<256x256xf32>
      %c0_12 = arith.constant 0 : index
      %c0_13 = arith.constant 0 : index
      %13 = vector.load %arg5[%c0_12, %c0_13] : memref<256x256xf32, #tpu.memory_space<vmem>>, vector<256x256xf32>
      tpu.vector_store %arg5[%c0_12, %c0_13], %12 {strides = array<i32>} : memref<256x256xf32, #tpu.memory_space<vmem>>, vector<256x256xf32>,
    } else {
    }
    return
  }
  func.func @transform_0(%arg0: i32, %arg1: i32, %arg2: i32) -> (i32, i32) {
    %c0_i32 = arith.constant 0 : i32
    return %arg0, %arg2 : i32, i32
  }
  func.func @transform_1(%arg0: i32, %arg1: i32, %arg2: i32) -> (i32, i32) {
    %c0_i32 = arith.constant 0 : i32
    return %arg2, %arg1 : i32, i32
  }
  func.func @transform_2(%arg0: i32, %arg1: i32, %arg2: i32) -> (i32, i32) {
    %c0_i32 = arith.constant 0 : i32
    return %arg0, %arg1 : i32, i32
  }
}

</mosaic_0001>

<bundles_post_ra>
// kernel: tpu_custom_call.1
= control target key start
LH: loop header
LB: loop body
LE: loop exit
PB: predicated region body
PF: predicated region fallthrough
CT: control target
= control target key end

     0   :  { %7 = vsyncpa [#allocation4], 0  ;;  %s1880_s0 = inlined_call_operand.hbm [shape: f32[256,256], index: 0, kind: input, shape index: {}]   ;;  %s1881_s1 = inlined_call_operand.hbm [shape: f32[256,768], index: 1, kind: input, shape index: {}]   ;;  %s1882_s2 = inlined_call_operand.hbm [shape: f32[256,768], index: 2, kind: output, shape index: {}]  }
   0x1   :  { %8 = vsyncpa [#allocation7], 0 }
   0x2   :  { %10 = vsyncpa [#allocation7 + $0x1], 0 }
   0x3   :  { %11 = vsyncpa [#allocation5], 0 }
   0x4   :  { %13 = vsyncpa [#allocation5 + $0x1], 0  ;;  %s1591_s9 = smov 0   ;;  %s1593_s10 = smov 0  }
   0x5   :  { %s1595_s11 = smov 0   ;;  %s1597_s12 = smov 0  }
   0x6   :  { %s1599_s13 = smov 0   ;;  %s1601_s14 = smov 0  }
   0x7 LB: > { %s1323_s15 = sadd.s32 4294967295, %s1567_s14   ;;  %s1324_s16 = sadd.s32 4294967294, %s1567_s14   ;;  %s1567_s14 = sphi %s1601_s14, %s19_s14   ;;  %s1563_s13 = sphi %s1599_s13, %s1896_s13   ;;  %s1559_s12 = sphi %s1597_s12, %s1895_s12   ;;  %s1555_s11 = sphi %s1595_s11, %s1894_s11   ;;  %s1551_s10 = sphi %s1593_s10, %s1893_s10   ;;  %s1547_s9 = sphi %s1591_s9, %s1892_s9  }
   0x8   : > { %p88_p0 = scmp.ne.s32.totalorder %s1551_s10, %s1547_s9  ;;  %p1625_p1 = scmp.eq.s32.totalorder %s1323_s15, 0 }
   0x9   : > { %p1629_p2 = scmp.eq.s32.totalorder %s1323_s15, 2  ;;  %p120_p3 = scmp.eq.s32.totalorder %s1324_s16, 2 }
   0xa   : > { %p1635_p4 = por %p1625_p1, %p88_p0  ;;  %p1325_p5 = scmp.ge.s32.totalorder %s1567_s14, 1 }
   0xb   : > { %p1640_p6 = por %p120_p3, %p88_p0  ;;  %p127_p7 = scmp.lt.s32.totalorder %s1567_s14, 4 }
   0xc   : > { %s144_s23 = sshll.u32 %s1880_s0, 4  ;;  %s1569_s25 = smov [#allocation3]   ;;  %s145_s23 = int_to_ptr.hbm [resolvable:$true] %s144_s23 }
   0xd   : > { %p1648_p8 = pnand %p1325_p5, %p127_p7  ;;  %s146_s26 = sshll.u32 %s1569_s25, 4  ;;  %s147_s26 = int_to_ptr.vmem [resolvable:$true] %s146_s26 }
   0xe   : > { %s1883_s27 = smov 256   ;;  %s1571_s28 = smov 16  }
   0xf   : > { %p1350_p9 = pneg %p1648_p8  ;;  %s34_s29 = sadd.s32 1, %s1563_s13 }
  0x10   : > { %p36_p11 = scmp.ge.s32.totalorder %s34_s29, 3  ;;  %s75_s30 = sadd.s32 1, %s1555_s11 }
  0x11   : > { %p1351_p10 = pnand %p1350_p9, %p1625_p1  ;;  %p82_p12 = scmp.ne.s32.totalorder %s1555_s11, %s1551_s10 }
  0x12   : > { %p83_p13 = scmp.eq.s32.totalorder %s1567_s14, 0  ;;  %s1898_s29 = smov (%p36_p11, %s34_s29), 0 }
  0x13   : > { %1353 = dma.hbm_to_vmem [thread:$0]  (!%p1351_p10), %s145_s23, 8192, %s147_s26, [#allocation4], %s1883_s27, %s1883_s27, %s1571_s28  }
  0x14   : > { %p1666_p0 = por %p83_p13, %p82_p12  ;;  %p1672_p3 = por %p1629_p2, %p82_p12 }
  0x15   : > { %s71_s5 = ssub.s32 %s1563_s13, %s1898_s29  ;;  %p1363_p5 = scmp.lt.s32.totalorder %s1567_s14, 3 }
  0x16   : > { %p73_p7 = scmp.eq.s32.totalorder %s71_s5, 0  ;;  %s160_s6 = sand.u32 1, %s1555_s11  }
  0x17   : > { %s1328_s7 = sshll.u32 %s160_s6, 9  ;;  %s1340_s15 = sshll.u32 %s1563_s13, 4 }
  0x18   : > { %s1681_s8 = scalar_select %p73_p7, %s1555_s11, %s75_s30  }
  0x19   : > { %s172_s22 = scalar_lea.hbm %s1881_s1, %s1340_s15  ;;  %s164_s23 = scalar_lea.vmem [#allocation6], %s1328_s7 }
  0x1a   : > { %s175_s25 = sshll.u32 %s164_s23, 4  ;;  %s173_s18 = sshll.u32 %s172_s22, 4  ;;  %s176_s25 = int_to_ptr.vmem [resolvable:$true] %s175_s25  ;;  %s174_s18 = int_to_ptr.hbm [resolvable:$true] %s173_s18 }
  0x1b   : > { %p1355_p2 = pnand %p1363_p5, %p1666_p0  ;;  %s161_s26 = scalar_lea.sflag [#allocation7], %s160_s6 }
  0x1c   : > { %s1572_s27 = smov 768   ;;  %s1891_s5 = smov 256  }
  0x1d   : > { %1357 = dma.hbm_to_vmem [thread:$0]  (!%p1355_p2), %s174_s18, 8192, %s176_s25, %s161_s26, %s1572_s27, %s1891_s5, %s1571_s28  }
  0x1e   : > { %187 = sbr.rel (%p1648_p8) target bundleno = 460 (0x1cc), region = 28 }
  0x23   : > { %1534 = dma.done.wait (%p1625_p1), [#allocation4], 8192  }
  0x24   : > { %1536 = vsyncadd (%p1625_p1), [#allocation4], 4294959104  ;;  %s1698_s30 = sand.u32 1, %s1551_s10  }
  0x25   : > { %s1333_s3 = sshll.u32 %s1698_s30, 9  ;;  %s195_s6 = scalar_lea.sflag [#allocation7], %s1698_s30 }
  0x26   : > { %s1704_s27 = scalar_lea.vmem [#allocation6], %s1333_s3 }
  0x27   : > { %1538 = dma.done.wait (%p1635_p4), %s195_s6, 8192  }
  0x28   : > { %1540 = vsyncadd (%p1635_p4), %s195_s6, 4294959104  ;;  %v453_v0 = vld [vmem:[%s1704_s27 + $0xf8] sm:$0xff]  ;;  %v451_v2 = vld [vmem:[%s1704_s27 + $0xe8] sm:$0xff]  ;;  %s1776_s17 = scalar_lea.vmem [#allocation8], %s1333_s3  ;;  %s1341_s19 = sshll.u32 %s1559_s12, 4 }
  0x29   : > { %v485_v1 = vld [vmem:[%s1704_s27 + $0x1f8] sm:$0xff]  ;;  %712 = vmatpush.msra.mxu2 %v453_v0  ;;  %v483_v3 = vld [vmem:[%s1704_s27 + $0x1e8] sm:$0xff]  ;;  %v452_v6 = vld [vmem:[%s1704_s27 + $0xf0] sm:$0xff]  ;;  %s1212_s7 = scalar_lea.hbm %s1882_s2, %s1341_s19  ;;  %s1213_s15 = sshll.u32 %s1776_s17, 4  ;;  %s1214_s15 = int_to_ptr.vmem [resolvable:$true] %s1213_s15 }
  0x2a   : > { %825 = vmatpush.msra.mxu3 %v485_v1  ;;  %v449_v4 = vld [vmem:[%s1704_s27 + $0xd8] sm:$0xff]  ;;  %v484_v7 = vld [vmem:[%s1704_s27 + $0x1f0] sm:$0xff]  ;;  %v450_v8 = vld [vmem:[%s1704_s27 + $0xe0] sm:$0xff]  ;;  %486 = vmatpush.msra.mxu0 %v452_v6  ;;  %s1215_s16 = sshll.u32 %s1212_s7, 4  ;;  %s1198_s12 = scalar_lea.sflag [#allocation5], %s1698_s30  ;;  %s1216_s16 = int_to_ptr.hbm [resolvable:$true] %s1215_s16 }
  0x2b   : > { %v481_v5 = vld [vmem:[%s1704_s27 + $0x1d8] sm:$0xff]  ;;  %713 = vmatpush.msra.mxu2 %v451_v2  ;;  %v482_v9 = vld [vmem:[%s1704_s27 + $0x1e0] sm:$0xff]  ;;  %599 = vmatpush.msra.mxu1 %v484_v7  ;;  %v447_v10 = vld [vmem:[%s1704_s27 + $0xc8] sm:$0xff]  ;;  %s1495_s21 = sshra.s32 %s1216_s16, 4  ;;  %s1501_s18 = scalar_lea.hbm %s1882_s2, 1536  ;;  %s1496_s21 = int_to_ptr.hbm [resolvable:$true] %s1495_s21 }
  0x2c   : > { %826 = vmatpush.msra.mxu3 %v483_v3  ;;  %v479_v11 = vld [vmem:[%s1704_s27 + $0x1c8] sm:$0xff]  ;;  %v448_v12 = vld [vmem:[%s1704_s27 + $0xd0] sm:$0xff]  ;;  %487 = vmatpush.msra.mxu0 %v450_v8  ;;  %v445_v14 = vld [vmem:[%s1704_s27 + $0xb8] sm:$0xff]  ;;  %s1497_s22 = scalar_lea.hbm %s1496_s21, 512  ;;  %p1502_p9 = scmp.lt.s32.totalorder %s1496_s21, %s1882_s2 }
  0x2d   : > { %714 = vmatpush.msra.mxu2 %v449_v4  ;;  %v480_v13 = vld [vmem:[%s1704_s27 + $0x1d0] sm:$0xff]  ;;  %600 = vmatpush.msra.mxu1 %v482_v9  ;;  %v477_v15 = vld [vmem:[%s1704_s27 + $0x1b8] sm:$0xff]  ;;  %v446_v16 = vld [vmem:[%s1704_s27 + $0xc0] sm:$0xff]  ;;  %p1498_p1 = scmp.ne.s32.totalorder %s1496_s21, %s1497_s22  ;;  %p1503_p10 = scmp.lt.s32.totalorder %s1501_s18, %s1497_s22 }
  0x2e   : > { %827 = vmatpush.msra.mxu3 %v481_v5  ;;  %v478_v17 = vld [vmem:[%s1704_s27 + $0x1c0] sm:$0xff]  ;;  %488 = vmatpush.msra.mxu0 %v448_v12  ;;  %v443_v18 = vld [vmem:[%s1704_s27 + $0xa8] sm:$0xff]  ;;  %v444_v20 = vld [vmem:[%s1704_s27 + $0xb0] sm:$0xff] }
  0x2f   : > { %715 = vmatpush.msra.mxu2 %v447_v10  ;;  %601 = vmatpush.msra.mxu1 %v480_v13  ;;  %v475_v19 = vld [vmem:[%s1704_s27 + $0x1a8] sm:$0xff]  ;;  %v476_v21 = vld [vmem:[%s1704_s27 + $0x1b0] sm:$0xff]  ;;  %v441_v22 = vld [vmem:[%s1704_s27 + $0x98] sm:$0xff]  ;;  %p1499_p4 = pnand %p1498_p1, %p1672_p3  ;;  %p1504_p11 = por %p1503_p10, %p1502_p9 }
  0x30   : > { %828 = vmatpush.msra.mxu3 %v479_v11  ;;  %489 = vmatpush.msra.mxu0 %v446_v16  ;;  %v473_v23 = vld [vmem:[%s1704_s27 + $0x198] sm:$0xff]  ;;  %v442_v24 = vld [vmem:[%s1704_s27 + $0xa0] sm:$0xff]  ;;  %v439_v26 = vld [vmem:[%s1704_s27 + $0x88] sm:$0xff] }
  0x31   : > { %716 = vmatpush.msra.mxu2 %v445_v14  ;;  %602 = vmatpush.msra.mxu1 %v478_v17  ;;  %v474_v25 = vld [vmem:[%s1704_s27 + $0x1a0] sm:$0xff]  ;;  %v471_v27 = vld [vmem:[%s1704_s27 + $0x188] sm:$0xff]  ;;  %v440_v28 = vld [vmem:[%s1704_s27 + $0x90] sm:$0xff]  ;;  %p1500_p8 = pneg %p1499_p4 }
  0x32   : > { %829 = vmatpush.msra.mxu3 %v477_v15  ;;  %490 = vmatpush.msra.mxu0 %v444_v20  ;;  %v472_v29 = vld [vmem:[%s1704_s27 + $0x190] sm:$0xff]  ;;  %v437_v30 = vld [vmem:[%s1704_s27 + $0x78] sm:$0xff]  ;;  %v438_v32 = vld [vmem:[%s1704_s27 + $0x80] sm:$0xff] }
  0x33   : > { %717 = vmatpush.msra.mxu2 %v443_v18  ;;  %603 = vmatpush.msra.mxu1 %v476_v21  ;;  %v469_v31 = vld [vmem:[%s1704_s27 + $0x178] sm:$0xff]  ;;  %v470_v33 = vld [vmem:[%s1704_s27 + $0x180] sm:$0xff]  ;;  %v435_v34 = vld [vmem:[%s1704_s27 + $0x68] sm:$0xff]  ;;  %p1505_p12 = pnand %p1504_p11, %p1500_p8 }
  0x34   : > { %830 = vmatpush.msra.mxu3 %v475_v19  ;;  %491 = vmatpush.msra.mxu0 %v442_v24  ;;  %v467_v35 = vld [vmem:[%s1704_s27 + $0x168] sm:$0xff]  ;;  %v436_v36 = vld [vmem:[%s1704_s27 + $0x70] sm:$0xff]  ;;  %v433_v38 = vld [vmem:[%s1704_s27 + $0x58] sm:$0xff] }
  0x35   : > { %718 = vmatpush.msra.mxu2 %v441_v22  ;;  %604 = vmatpush.msra.mxu1 %v474_v25  ;;  %v468_v37 = vld [vmem:[%s1704_s27 + $0x170] sm:$0xff]  ;;  %v465_v39 = vld [vmem:[%s1704_s27 + $0x158] sm:$0xff]  ;;  %v434_v40 = vld [vmem:[%s1704_s27 + $0x60] sm:$0xff] }
  0x36   : > { %831 = vmatpush.msra.mxu3 %v473_v23  ;;  %492 = vmatpush.msra.mxu0 %v440_v28  ;;  %v466_v41 = vld [vmem:[%s1704_s27 + $0x160] sm:$0xff]  ;;  %v431_v42 = vld [vmem:[%s1704_s27 + $0x48] sm:$0xff]  ;;  %v432_v44 = vld [vmem:[%s1704_s27 + $0x50] sm:$0xff] }
  0x37   : > { %719 = vmatpush.msra.mxu2 %v439_v26  ;;  %605 = vmatpush.msra.mxu1 %v472_v29  ;;  %v463_v43 = vld [vmem:[%s1704_s27 + $0x148] sm:$0xff]  ;;  %v464_v45 = vld [vmem:[%s1704_s27 + $0x150] sm:$0xff]  ;;  %v429_v46 = vld [vmem:[%s1704_s27 + $0x38] sm:$0xff] }
  0x38   : > { %832 = vmatpush.msra.mxu3 %v471_v27  ;;  %493 = vmatpush.msra.mxu0 %v438_v32  ;;  %v461_v47 = vld [vmem:[%s1704_s27 + $0x138] sm:$0xff]  ;;  %v430_v48 = vld [vmem:[%s1704_s27 + $0x40] sm:$0xff]  ;;  %v427_v50 = vld [vmem:[%s1704_s27 + $0x28] sm:$0xff] }
  0x39   : > { %720 = vmatpush.msra.mxu2 %v437_v30  ;;  %606 = vmatpush.msra.mxu1 %v470_v33  ;;  %v462_v49 = vld [vmem:[%s1704_s27 + $0x140] sm:$0xff]  ;;  %v459_v51 = vld [vmem:[%s1704_s27 + $0x128] sm:$0xff]  ;;  %v428_v52 = vld [vmem:[%s1704_s27 + $0x30] sm:$0xff] }
  0x3a   : > { %833 = vmatpush.msra.mxu3 %v469_v31  ;;  %494 = vmatpush.msra.mxu0 %v436_v36  ;;  %v460_v53 = vld [vmem:[%s1704_s27 + $0x130] sm:$0xff]  ;;  %v425_v54 = vld [vmem:[%s1704_s27 + $0x18] sm:$0xff]  ;;  %v426_v56 = vld [vmem:[%s1704_s27 + $0x20] sm:$0xff] }
  0x3b   : > { %721 = vmatpush.msra.mxu2 %v435_v34  ;;  %607 = vmatpush.msra.mxu1 %v468_v37  ;;  %v457_v55 = vld [vmem:[%s1704_s27 + $0x118] sm:$0xff]  ;;  %v458_v57 = vld [vmem:[%s1704_s27 + $0x120] sm:$0xff]  ;;  %v423_v58 = vld [vmem:[%s1704_s27 + $0x8] sm:$0xff] }
  0x3c   : > { %834 = vmatpush.msra.mxu3 %v467_v35  ;;  %495 = vmatpush.msra.mxu0 %v434_v40  ;;  %v455_v59 = vld [vmem:[%s1704_s27 + $0x108] sm:$0xff]  ;;  %v358_v60 = vld [vmem:[#allocation3] sm:$0xff]  ;;  %v424_v62 = vld [vmem:[%s1704_s27 + $0x10] sm:$0xff] }
  0x3d   : > { %722 = vmatpush.msra.mxu2 %v433_v38  ;;  %608 = vmatpush.msra.mxu1 %v466_v41  ;;  %v359_v61 = vld [vmem:[#allocation3 + $0x8] sm:$0xff]  ;;  %v456_v63 = vld [vmem:[%s1704_s27 + $0x110] sm:$0xff]  ;;  %v422_v0 = vld [vmem:[%s1704_s27] sm:$0xff] }
  0x3e   : > { %835 = vmatpush.msra.mxu3 %v465_v39  ;;  %496 = vmatpush.msra.mxu0 %v432_v44  ;;  %v454_v1 = vld [vmem:[%s1704_s27 + $0x100] sm:$0xff]  ;;  %v360_v2 = vld [vmem:[#allocation3 + $0x10] sm:$0xff]  ;;  %v361_v3 = vld [vmem:[#allocation3 + $0x18] sm:$0xff] }
  0x3f   : > { %723 = vmatpush.msra.mxu2 %v431_v42  ;;  %609 = vmatpush.msra.mxu1 %v464_v45  ;;  %v362_v4 = vld [vmem:[#allocation3 + $0x20] sm:$0xff]  ;;  %v363_v5 = vld [vmem:[#allocation3 + $0x28] sm:$0xff]  ;;  %v364_v6 = vld [vmem:[#allocation3 + $0x30] sm:$0xff] }
  0x40   : > { %836 = vmatpush.msra.mxu3 %v463_v43  ;;  %497 = vmatpush.msra.mxu0 %v430_v48  ;;  %v365_v7 = vld [vmem:[#allocation3 + $0x38] sm:$0xff]  ;;  %v366_v8 = vld [vmem:[#allocation3 + $0x40] sm:$0xff]  ;;  %v367_v9 = vld [vmem:[#allocation3 + $0x48] sm:$0xff] }
  0x41   : > { %724 = vmatpush.msra.mxu2 %v429_v46  ;;  %610 = vmatpush.msra.mxu1 %v462_v49  ;;  %v368_v10 = vld [vmem:[#allocation3 + $0x50] sm:$0xff]  ;;  %v369_v11 = vld [vmem:[#allocation3 + $0x58] sm:$0xff]  ;;  %v370_v12 = vld [vmem:[#allocation3 + $0x60] sm:$0xff] }
  0x42   : > { %837 = vmatpush.msra.mxu3 %v461_v47  ;;  %498 = vmatpush.msra.mxu0 %v428_v52  ;;  %v371_v13 = vld [vmem:[#allocation3 + $0x68] sm:$0xff]  ;;  %v372_v14 = vld [vmem:[#allocation3 + $0x70] sm:$0xff]  ;;  %v373_v15 = vld [vmem:[#allocation3 + $0x78] sm:$0xff] }
  0x43   : > { %725 = vmatpush.msra.mxu2 %v427_v50  ;;  %611 = vmatpush.msra.mxu1 %v460_v53  ;;  %v374_v16 = vld [vmem:[#allocation3 + $0x80] sm:$0xff]  ;;  %v375_v17 = vld [vmem:[#allocation3 + $0x88] sm:$0xff]  ;;  %v376_v18 = vld [vmem:[#allocation3 + $0x90] sm:$0xff] }
  0x44   : > { %838 = vmatpush.msra.mxu3 %v459_v51  ;;  %499 = vmatpush.msra.mxu0 %v426_v56  ;;  %v377_v19 = vld [vmem:[#allocation3 + $0x98] sm:$0xff]  ;;  %v378_v20 = vld [vmem:[#allocation3 + $0xa0] sm:$0xff]  ;;  %v379_v21 = vld [vmem:[#allocation3 + $0xa8] sm:$0xff] }
  0x45   : > { %726 = vmatpush.msra.mxu2 %v425_v54  ;;  %612 = vmatpush.msra.mxu1 %v458_v57  ;;  %v380_v22 = vld [vmem:[#allocation3 + $0xb0] sm:$0xff]  ;;  %v381_v23 = vld [vmem:[#allocation3 + $0xb8] sm:$0xff]  ;;  %v382_v24 = vld [vmem:[#allocation3 + $0xc0] sm:$0xff] }
  0x46   : > { %839 = vmatpush.msra.mxu3 %v457_v55  ;;  %500 = vmatpush.msra.mxu0 %v424_v62  ;;  %v383_v25 = vld [vmem:[#allocation3 + $0xc8] sm:$0xff]  ;;  %v384_v26 = vld [vmem:[#allocation3 + $0xd0] sm:$0xff]  ;;  %v385_v27 = vld [vmem:[#allocation3 + $0xd8] sm:$0xff] }
  0x47   : > { %727 = vmatpush.msra.mxu2 %v423_v58  ;;  %613 = vmatpush.msra.mxu1 %v456_v63  ;;  %v386_v28 = vld [vmem:[#allocation3 + $0xe0] sm:$0xff]  ;;  %v387_v29 = vld [vmem:[#allocation3 + $0xe8] sm:$0xff]  ;;  %v388_v30 = vld [vmem:[#allocation3 + $0xf0] sm:$0xff] }
  0x48   : > { %840 = vmatpush.msra.mxu3 %v455_v59  ;;  %728 = vmatmul.f32.vlgmr.msra.gmra.mxu2 %v358_v60  ;;  %v389_v31 = vld [vmem:[#allocation3 + $0xf8] sm:$0xff]  ;;  %v390_v32 = vld [vmem:[#allocation3 + $0x100] sm:$0xff]  ;;  %v391_v33 = vld [vmem:[#allocation3 + $0x108] sm:$0xff] }
  0x49   : > { %841 = vmatmul.f32.vlgmr.msra.gmra.mxu3 %v359_v61  ;;  %501 = vmatpush.msra.mxu0 %v422_v0  ;;  %v392_v40 = vld [vmem:[#allocation3 + $0x110] sm:$0xff]  ;;  %v393_v41 = vld [vmem:[#allocation3 + $0x118] sm:$0xff]  ;;  %v394_v48 = vld [vmem:[#allocation3 + $0x120] sm:$0xff] }
  0x4a   : > { %614 = vmatpush.msra.mxu1 %v454_v1  ;;  %502 = vmatmul.f32.vlgmr.msra.gmra.mxu0 %v358_v60  ;;  %v395_v49 = vld [vmem:[#allocation3 + $0x128] sm:$0xff]  ;;  %v396_v56 = vld [vmem:[#allocation3 + $0x130] sm:$0xff]  ;;  %v397_v57 = vld [vmem:[#allocation3 + $0x138] sm:$0xff] }
  0x4b   : > { %615 = vmatmul.f32.vlgmr.msra.gmra.mxu1 %v359_v61  ;;  %v398_v0 = vld [vmem:[#allocation3 + $0x140] sm:$0xff]  ;;  %v399_v1 = vld [vmem:[#allocation3 + $0x148] sm:$0xff] }
  0x50   : > { %731 = vmatmul.f32.gmra.mxu2 %v360_v2 }
  0x51   : > { %844 = vmatmul.f32.gmra.mxu3 %v361_v3 }
  0x52   : > { %505 = vmatmul.f32.gmra.mxu0 %v360_v2 }
  0x53   : > { %618 = vmatmul.f32.gmra.mxu1 %v361_v3 }
  0x58   : > { %734 = vmatmul.f32.gmra.mxu2 %v362_v4 }
  0x59   : > { %847 = vmatmul.f32.gmra.mxu3 %v363_v5 }
  0x5a   : > { %508 = vmatmul.f32.gmra.mxu0 %v362_v4 }
  0x5b   : > { %621 = vmatmul.f32.gmra.mxu1 %v363_v5 }
  0x60   : > { %737 = vmatmul.f32.gmra.mxu2 %v364_v6 }
  0x61   : > { %850 = vmatmul.f32.gmra.mxu3 %v365_v7 }
  0x62   : > { %511 = vmatmul.f32.gmra.mxu0 %v364_v6 }
  0x63   : > { %624 = vmatmul.f32.gmra.mxu1 %v365_v7 }
  0x68   : > { %740 = vmatmul.f32.gmra.mxu2 %v366_v8 }
  0x69   : > { %853 = vmatmul.f32.gmra.mxu3 %v367_v9 }
  0x6a   : > { %514 = vmatmul.f32.gmra.mxu0 %v366_v8  ;;  %v400_v8 = vld [vmem:[#allocation3 + $0x150] sm:$0xff] }
  0x6b   : > { %627 = vmatmul.f32.gmra.mxu1 %v367_v9  ;;  %v401_v9 = vld [vmem:[#allocation3 + $0x158] sm:$0xff] }
  0x70   : > { %743 = vmatmul.f32.gmra.mxu2 %v368_v10 }
  0x71   : > { %856 = vmatmul.f32.gmra.mxu3 %v369_v11 }
  0x72   : > { %517 = vmatmul.f32.gmra.mxu0 %v368_v10 }
  0x73   : > { %630 = vmatmul.f32.gmra.mxu1 %v369_v11 }
  0x78   : > { %746 = vmatmul.f32.gmra.mxu2 %v370_v12 }
  0x79   : > { %859 = vmatmul.f32.gmra.mxu3 %v371_v13 }
  0x7a   : > { %520 = vmatmul.f32.gmra.mxu0 %v370_v12 }
  0x7b   : > { %633 = vmatmul.f32.gmra.mxu1 %v371_v13 }
  0x80   : > { %749 = vmatmul.f32.gmra.mxu2 %v372_v14 }
  0x81   : > { %862 = vmatmul.f32.gmra.mxu3 %v373_v15 }
  0x82   : > { %523 = vmatmul.f32.gmra.mxu0 %v372_v14 }
  0x83   : > { %636 = vmatmul.f32.gmra.mxu1 %v373_v15 }
  0x88   : > { %752 = vmatmul.f32.gmra.mxu2 %v374_v16 }
  0x89   : > { %865 = vmatmul.f32.gmra.mxu3 %v375_v17 }
  0x8a   : > { %526 = vmatmul.f32.gmra.mxu0 %v374_v16  ;;  %v402_v16 = vld [vmem:[#allocation3 + $0x160] sm:$0xff] }
  0x8b   : > { %639 = vmatmul.f32.gmra.mxu1 %v375_v17  ;;  %v403_v17 = vld [vmem:[#allocation3 + $0x168] sm:$0xff] }
  0x90   : > { %755 = vmatmul.f32.gmra.mxu2 %v376_v18 }
  0x91   : > { %868 = vmatmul.f32.gmra.mxu3 %v377_v19 }
  0x92   : > { %529 = vmatmul.f32.gmra.mxu0 %v376_v18 }
  0x93   : > { %642 = vmatmul.f32.gmra.mxu1 %v377_v19 }
  0x98   : > { %758 = vmatmul.f32.gmra.mxu2 %v378_v20 }
  0x99   : > { %871 = vmatmul.f32.gmra.mxu3 %v379_v21 }
  0x9a   : > { %532 = vmatmul.f32.gmra.mxu0 %v378_v20 }
  0x9b   : > { %645 = vmatmul.f32.gmra.mxu1 %v379_v21 }
  0xa0   : > { %761 = vmatmul.f32.gmra.mxu2 %v380_v22 }
  0xa1   : > { %874 = vmatmul.f32.gmra.mxu3 %v381_v23 }
  0xa2   : > { %535 = vmatmul.f32.gmra.mxu0 %v380_v22 }
  0xa3   : > { %648 = vmatmul.f32.gmra.mxu1 %v381_v23 }
  0xa8   : > { %764 = vmatmul.f32.gmra.mxu2 %v382_v24 }
  0xa9   : > { %877 = vmatmul.f32.gmra.mxu3 %v383_v25 }
  0xaa   : > { %538 = vmatmul.f32.gmra.mxu0 %v382_v24  ;;  %v404_v24 = vld [vmem:[#allocation3 + $0x170] sm:$0xff] }
  0xab   : > { %651 = vmatmul.f32.gmra.mxu1 %v383_v25  ;;  %v405_v25 = vld [vmem:[#allocation3 + $0x178] sm:$0xff] }
  0xb0   : > { %767 = vmatmul.f32.gmra.mxu2 %v384_v26 }
  0xb1   : > { %880 = vmatmul.f32.gmra.mxu3 %v385_v27 }
  0xb2   : > { %541 = vmatmul.f32.gmra.mxu0 %v384_v26 }
  0xb3   : > { %654 = vmatmul.f32.gmra.mxu1 %v385_v27 }
  0xb8   : > { %770 = vmatmul.f32.gmra.mxu2 %v386_v28 }
  0xb9   : > { %883 = vmatmul.f32.gmra.mxu3 %v387_v29 }
  0xba   : > { %544 = vmatmul.f32.gmra.mxu0 %v386_v28 }
  0xbb   : > { %657 = vmatmul.f32.gmra.mxu1 %v387_v29 }
  0xc0   : > { %773 = vmatmul.f32.gmra.mxu2 %v388_v30 }
  0xc1   : > { %886 = vmatmul.f32.gmra.mxu3 %v389_v31 }
  0xc2   : > { %547 = vmatmul.f32.gmra.mxu0 %v388_v30 }
  0xc3   : > { %660 = vmatmul.f32.gmra.mxu1 %v389_v31 }
  0xc7   : > { %v503_v34 = vpop.f32.mrf.mxu0 }
  0xc8   : > { %776 = vmatmul.f32.gmra.mxu2 %v390_v32  ;;  %v616_v35 = vpop.f32.mrf.mxu1 }
  0xc9   : > { %889 = vmatmul.f32.gmra.mxu3 %v391_v33  ;;  %v617_v36 = vadd.f32 %v616_v35, %v503_v34 }
  0xca   : > { %550 = vmatmul.f32.gmra.mxu0 %v390_v32  ;;  %v406_v32 = vld [vmem:[#allocation3 + $0x180] sm:$0xff] }
  0xcb   : > { %v729_v37 = vpop.f32.mrf.mxu2  ;;  %1133 = vst [vmem:[%s1776_s17] sm:$0xff] %v617_v36  ;;  %663 = vmatmul.f32.gmra.mxu1 %v391_v33  ;;  %v407_v33 = vld [vmem:[#allocation3 + $0x188] sm:$0xff] }
  0xcc   : > { %v842_v38 = vpop.f32.mrf.mxu3 }
  0xcd   : > { %v843_v39 = vadd.f32 %v842_v38, %v729_v37 }
  0xcf   : > { %1134 = vst [vmem:[%s1776_s17 + $0x8] sm:$0xff] %v843_v39  ;;  %v506_v42 = vpop.f32.mrf.mxu0 }
  0xd0   : > { %779 = vmatmul.f32.gmra.mxu2 %v392_v40  ;;  %v619_v43 = vpop.f32.mrf.mxu1 }
  0xd1   : > { %892 = vmatmul.f32.gmra.mxu3 %v393_v41  ;;  %v620_v44 = vadd.f32 %v619_v43, %v506_v42 }
  0xd2   : > { %553 = vmatmul.f32.gmra.mxu0 %v392_v40  ;;  %v408_v40 = vld [vmem:[#allocation3 + $0x190] sm:$0xff] }
  0xd3   : > { %v732_v45 = vpop.f32.mrf.mxu2  ;;  %1135 = vst [vmem:[%s1776_s17 + $0x10] sm:$0xff] %v620_v44  ;;  %666 = vmatmul.f32.gmra.mxu1 %v393_v41  ;;  %v409_v41 = vld [vmem:[#allocation3 + $0x198] sm:$0xff] }
  0xd4   : > { %v845_v46 = vpop.f32.mrf.mxu3 }
  0xd5   : > { %v846_v47 = vadd.f32 %v845_v46, %v732_v45 }
  0xd7   : > { %1136 = vst [vmem:[%s1776_s17 + $0x18] sm:$0xff] %v846_v47  ;;  %v509_v50 = vpop.f32.mrf.mxu0 }
  0xd8   : > { %782 = vmatmul.f32.gmra.mxu2 %v394_v48  ;;  %v622_v51 = vpop.f32.mrf.mxu1 }
  0xd9   : > { %895 = vmatmul.f32.gmra.mxu3 %v395_v49  ;;  %v623_v52 = vadd.f32 %v622_v51, %v509_v50 }
  0xda   : > { %556 = vmatmul.f32.gmra.mxu0 %v394_v48  ;;  %v410_v48 = vld [vmem:[#allocation3 + $0x1a0] sm:$0xff] }
  0xdb   : > { %v735_v53 = vpop.f32.mrf.mxu2  ;;  %1137 = vst [vmem:[%s1776_s17 + $0x20] sm:$0xff] %v623_v52  ;;  %669 = vmatmul.f32.gmra.mxu1 %v395_v49  ;;  %v411_v49 = vld [vmem:[#allocation3 + $0x1a8] sm:$0xff] }
  0xdc   : > { %v848_v54 = vpop.f32.mrf.mxu3 }
  0xdd   : > { %v849_v55 = vadd.f32 %v848_v54, %v735_v53 }
  0xdf   : > { %1138 = vst [vmem:[%s1776_s17 + $0x28] sm:$0xff] %v849_v55  ;;  %v512_v58 = vpop.f32.mrf.mxu0 }
  0xe0   : > { %785 = vmatmul.f32.gmra.mxu2 %v396_v56  ;;  %v625_v59 = vpop.f32.mrf.mxu1 }
  0xe1   : > { %898 = vmatmul.f32.gmra.mxu3 %v397_v57  ;;  %v626_v60 = vadd.f32 %v625_v59, %v512_v58 }
  0xe2   : > { %559 = vmatmul.f32.gmra.mxu0 %v396_v56  ;;  %v412_v56 = vld [vmem:[#allocation3 + $0x1b0] sm:$0xff] }
  0xe3   : > { %v738_v61 = vpop.f32.mrf.mxu2  ;;  %1139 = vst [vmem:[%s1776_s17 + $0x30] sm:$0xff] %v626_v60  ;;  %672 = vmatmul.f32.gmra.mxu1 %v397_v57  ;;  %v413_v57 = vld [vmem:[#allocation3 + $0x1b8] sm:$0xff] }
  0xe4   : > { %v851_v62 = vpop.f32.mrf.mxu3 }
  0xe5   : > { %v852_v63 = vadd.f32 %v851_v62, %v738_v61 }
  0xe7   : > { %1140 = vst [vmem:[%s1776_s17 + $0x38] sm:$0xff] %v852_v63  ;;  %v515_v2 = vpop.f32.mrf.mxu0 }
  0xe8   : > { %788 = vmatmul.f32.gmra.mxu2 %v398_v0  ;;  %v628_v3 = vpop.f32.mrf.mxu1 }
  0xe9   : > { %901 = vmatmul.f32.gmra.mxu3 %v399_v1  ;;  %v629_v4 = vadd.f32 %v628_v3, %v515_v2 }
  0xea   : > { %562 = vmatmul.f32.gmra.mxu0 %v398_v0  ;;  %v414_v0 = vld [vmem:[#allocation3 + $0x1c0] sm:$0xff] }
  0xeb   : > { %v741_v5 = vpop.f32.mrf.mxu2  ;;  %1141 = vst [vmem:[%s1776_s17 + $0x40] sm:$0xff] %v629_v4  ;;  %675 = vmatmul.f32.gmra.mxu1 %v399_v1  ;;  %v415_v1 = vld [vmem:[#allocation3 + $0x1c8] sm:$0xff] }
  0xec   : > { %v854_v6 = vpop.f32.mrf.mxu3 }
  0xed   : > { %v855_v7 = vadd.f32 %v854_v6, %v741_v5 }
  0xef   : > { %1142 = vst [vmem:[%s1776_s17 + $0x48] sm:$0xff] %v855_v7  ;;  %v518_v10 = vpop.f32.mrf.mxu0 }
  0xf0   : > { %791 = vmatmul.f32.gmra.mxu2 %v400_v8  ;;  %v631_v11 = vpop.f32.mrf.mxu1 }
  0xf1   : > { %904 = vmatmul.f32.gmra.mxu3 %v401_v9  ;;  %v632_v12 = vadd.f32 %v631_v11, %v518_v10 }
  0xf2   : > { %565 = vmatmul.f32.gmra.mxu0 %v400_v8  ;;  %v416_v8 = vld [vmem:[#allocation3 + $0x1d0] sm:$0xff] }
  0xf3   : > { %v744_v13 = vpop.f32.mrf.mxu2  ;;  %1143 = vst [vmem:[%s1776_s17 + $0x50] sm:$0xff] %v632_v12  ;;  %678 = vmatmul.f32.gmra.mxu1 %v401_v9  ;;  %v417_v9 = vld [vmem:[#allocation3 + $0x1d8] sm:$0xff] }
  0xf4   : > { %v857_v14 = vpop.f32.mrf.mxu3 }
  0xf5   : > { %v858_v15 = vadd.f32 %v857_v14, %v744_v13 }
  0xf7   : > { %1144 = vst [vmem:[%s1776_s17 + $0x58] sm:$0xff] %v858_v15  ;;  %v521_v18 = vpop.f32.mrf.mxu0 }
  0xf8   : > { %794 = vmatmul.f32.gmra.mxu2 %v402_v16  ;;  %v634_v19 = vpop.f32.mrf.mxu1 }
  0xf9   : > { %907 = vmatmul.f32.gmra.mxu3 %v403_v17  ;;  %v635_v20 = vadd.f32 %v634_v19, %v521_v18 }
  0xfa   : > { %568 = vmatmul.f32.gmra.mxu0 %v402_v16  ;;  %v418_v16 = vld [vmem:[#allocation3 + $0x1e0] sm:$0xff] }
  0xfb   : > { %v747_v21 = vpop.f32.mrf.mxu2  ;;  %1145 = vst [vmem:[%s1776_s17 + $0x60] sm:$0xff] %v635_v20  ;;  %681 = vmatmul.f32.gmra.mxu1 %v403_v17  ;;  %v419_v17 = vld [vmem:[#allocation3 + $0x1e8] sm:$0xff] }
  0xfc   : > { %v860_v22 = vpop.f32.mrf.mxu3 }
  0xfd   : > { %v861_v23 = vadd.f32 %v860_v22, %v747_v21 }
  0xff   : > { %1146 = vst [vmem:[%s1776_s17 + $0x68] sm:$0xff] %v861_v23  ;;  %v524_v26 = vpop.f32.mrf.mxu0 }
 0x100   : > { %797 = vmatmul.f32.gmra.mxu2 %v404_v24  ;;  %v637_v27 = vpop.f32.mrf.mxu1 }
 0x101   : > { %910 = vmatmul.f32.gmra.mxu3 %v405_v25  ;;  %v638_v28 = vadd.f32 %v637_v27, %v524_v26 }
 0x102   : > { %571 = vmatmul.f32.gmra.mxu0 %v404_v24  ;;  %v420_v24 = vld [vmem:[#allocation3 + $0x1f0] sm:$0xff] }
 0x103   : > { %v750_v29 = vpop.f32.mrf.mxu2  ;;  %1147 = vst [vmem:[%s1776_s17 + $0x70] sm:$0xff] %v638_v28  ;;  %684 = vmatmul.f32.gmra.mxu1 %v405_v25  ;;  %v421_v25 = vld [vmem:[#allocation3 + $0x1f8] sm:$0xff] }
 0x104   : > { %v863_v30 = vpop.f32.mrf.mxu3 }
 0x105   : > { %v864_v31 = vadd.f32 %v863_v30, %v750_v29 }
 0x107   : > { %1148 = vst [vmem:[%s1776_s17 + $0x78] sm:$0xff] %v864_v31  ;;  %v527_v34 = vpop.f32.mrf.mxu0 }
 0x108   : > { %800 = vmatmul.f32.gmra.mxu2 %v406_v32  ;;  %v640_v35 = vpop.f32.mrf.mxu1 }
 0x109   : > { %913 = vmatmul.f32.gmra.mxu3 %v407_v33  ;;  %v641_v36 = vadd.f32 %v640_v35, %v527_v34 }
 0x10a   : > { %574 = vmatmul.f32.gmra.mxu0 %v406_v32 }
 0x10b   : > { %v753_v37 = vpop.f32.mrf.mxu2  ;;  %1149 = vst [vmem:[%s1776_s17 + $0x80] sm:$0xff] %v641_v36  ;;  %687 = vmatmul.f32.gmra.mxu1 %v407_v33 }
 0x10c   : > { %v866_v38 = vpop.f32.mrf.mxu3 }
 0x10d   : > { %v867_v39 = vadd.f32 %v866_v38, %v753_v37 }
 0x10f   : > { %1150 = vst [vmem:[%s1776_s17 + $0x88] sm:$0xff] %v867_v39  ;;  %v530_v42 = vpop.f32.mrf.mxu0 }
 0x110   : > { %803 = vmatmul.f32.gmra.mxu2 %v408_v40  ;;  %v643_v43 = vpop.f32.mrf.mxu1 }
 0x111   : > { %916 = vmatmul.f32.gmra.mxu3 %v409_v41  ;;  %v644_v44 = vadd.f32 %v643_v43, %v530_v42 }
 0x112   : > { %577 = vmatmul.f32.gmra.mxu0 %v408_v40 }
 0x113   : > { %v756_v45 = vpop.f32.mrf.mxu2  ;;  %1151 = vst [vmem:[%s1776_s17 + $0x90] sm:$0xff] %v644_v44  ;;  %690 = vmatmul.f32.gmra.mxu1 %v409_v41 }
 0x114   : > { %v869_v46 = vpop.f32.mrf.mxu3 }
 0x115   : > { %v870_v47 = vadd.f32 %v869_v46, %v756_v45 }
 0x117   : > { %1152 = vst [vmem:[%s1776_s17 + $0x98] sm:$0xff] %v870_v47  ;;  %v533_v50 = vpop.f32.mrf.mxu0 }
 0x118   : > { %806 = vmatmul.f32.gmra.mxu2 %v410_v48  ;;  %v646_v51 = vpop.f32.mrf.mxu1 }
 0x119   : > { %919 = vmatmul.f32.gmra.mxu3 %v411_v49  ;;  %v647_v52 = vadd.f32 %v646_v51, %v533_v50 }
 0x11a   : > { %580 = vmatmul.f32.gmra.mxu0 %v410_v48 }
 0x11b   : > { %v759_v53 = vpop.f32.mrf.mxu2  ;;  %1153 = vst [vmem:[%s1776_s17 + $0xa0] sm:$0xff] %v647_v52  ;;  %693 = vmatmul.f32.gmra.mxu1 %v411_v49 }
 0x11c   : > { %v872_v54 = vpop.f32.mrf.mxu3 }
 0x11d   : > { %v873_v55 = vadd.f32 %v872_v54, %v759_v53 }
 0x11f   : > { %1154 = vst [vmem:[%s1776_s17 + $0xa8] sm:$0xff] %v873_v55  ;;  %v536_v58 = vpop.f32.mrf.mxu0 }
 0x120   : > { %809 = vmatmul.f32.gmra.mxu2 %v412_v56  ;;  %v649_v59 = vpop.f32.mrf.mxu1 }
 0x121   : > { %922 = vmatmul.f32.gmra.mxu3 %v413_v57  ;;  %v650_v60 = vadd.f32 %v649_v59, %v536_v58 }
 0x122   : > { %583 = vmatmul.f32.gmra.mxu0 %v412_v56 }
 0x123   : > { %v762_v61 = vpop.f32.mrf.mxu2  ;;  %1155 = vst [vmem:[%s1776_s17 + $0xb0] sm:$0xff] %v650_v60  ;;  %696 = vmatmul.f32.gmra.mxu1 %v413_v57 }
 0x124   : > { %v875_v62 = vpop.f32.mrf.mxu3 }
 0x125   : > { %v876_v63 = vadd.f32 %v875_v62, %v762_v61 }
 0x127   : > { %1156 = vst [vmem:[%s1776_s17 + $0xb8] sm:$0xff] %v876_v63  ;;  %v539_v2 = vpop.f32.mrf.mxu0 }
 0x128   : > { %812 = vmatmul.f32.gmra.mxu2 %v414_v0  ;;  %v652_v3 = vpop.f32.mrf.mxu1 }
 0x129   : > { %925 = vmatmul.f32.gmra.mxu3 %v415_v1  ;;  %v653_v4 = vadd.f32 %v652_v3, %v539_v2 }
 0x12a   : > { %586 = vmatmul.f32.gmra.mxu0 %v414_v0 }
 0x12b   : > { %v765_v5 = vpop.f32.mrf.mxu2  ;;  %1157 = vst [vmem:[%s1776_s17 + $0xc0] sm:$0xff] %v653_v4  ;;  %699 = vmatmul.f32.gmra.mxu1 %v415_v1 }
 0x12c   : > { %v878_v6 = vpop.f32.mrf.mxu3 }
 0x12d   : > { %v879_v7 = vadd.f32 %v878_v6, %v765_v5 }
 0x12f   : > { %1158 = vst [vmem:[%s1776_s17 + $0xc8] sm:$0xff] %v879_v7  ;;  %v542_v10 = vpop.f32.mrf.mxu0 }
 0x130   : > { %815 = vmatmul.f32.gmra.mxu2 %v416_v8  ;;  %v655_v11 = vpop.f32.mrf.mxu1 }
 0x131   : > { %928 = vmatmul.f32.gmra.mxu3 %v417_v9  ;;  %v656_v12 = vadd.f32 %v655_v11, %v542_v10 }
 0x132   : > { %589 = vmatmul.f32.gmra.mxu0 %v416_v8 }
 0x133   : > { %v768_v13 = vpop.f32.mrf.mxu2  ;;  %1159 = vst [vmem:[%s1776_s17 + $0xd0] sm:$0xff] %v656_v12  ;;  %702 = vmatmul.f32.gmra.mxu1 %v417_v9 }
 0x134   : > { %v881_v14 = vpop.f32.mrf.mxu3 }
 0x135   : > { %v882_v15 = vadd.f32 %v881_v14, %v768_v13 }
 0x137   : > { %1160 = vst [vmem:[%s1776_s17 + $0xd8] sm:$0xff] %v882_v15  ;;  %v545_v18 = vpop.f32.mrf.mxu0 }
 0x138   : > { %818 = vmatmul.f32.gmra.mxu2 %v418_v16  ;;  %v658_v19 = vpop.f32.mrf.mxu1 }
 0x139   : > { %931 = vmatmul.f32.gmra.mxu3 %v419_v17  ;;  %v659_v20 = vadd.f32 %v658_v19, %v545_v18 }
 0x13a   : > { %592 = vmatmul.f32.gmra.mxu0 %v418_v16 }
 0x13b   : > { %v771_v21 = vpop.f32.mrf.mxu2  ;;  %1161 = vst [vmem:[%s1776_s17 + $0xe0] sm:$0xff] %v659_v20  ;;  %705 = vmatmul.f32.gmra.mxu1 %v419_v17 }
 0x13c   : > { %v884_v22 = vpop.f32.mrf.mxu3 }
 0x13d   : > { %v885_v23 = vadd.f32 %v884_v22, %v771_v21 }
 0x13f   : > { %1162 = vst [vmem:[%s1776_s17 + $0xe8] sm:$0xff] %v885_v23  ;;  %v548_v26 = vpop.f32.mrf.mxu0 }
 0x140   : > { %821 = vmatmul.f32.gmra.mxu2 %v420_v24  ;;  %v661_v27 = vpop.f32.mrf.mxu1 }
 0x141   : > { %934 = vmatmul.f32.gmra.mxu3 %v421_v25  ;;  %v662_v28 = vadd.f32 %v661_v27, %v548_v26 }
 0x142   : > { %595 = vmatmul.f32.gmra.mxu0 %v420_v24 }
 0x143   : > { %v774_v29 = vpop.f32.mrf.mxu2  ;;  %1163 = vst [vmem:[%s1776_s17 + $0xf0] sm:$0xff] %v662_v28  ;;  %708 = vmatmul.f32.gmra.mxu1 %v421_v25 }
 0x144   : > { %v887_v30 = vpop.f32.mrf.mxu3 }
 0x145   : > { %v888_v31 = vadd.f32 %v887_v30, %v774_v29 }
 0x147   : > { %1164 = vst [vmem:[%s1776_s17 + $0xf8] sm:$0xff] %v888_v31  ;;  %v551_v32 = vpop.f32.mrf.mxu0 }
 0x148   : > { %v664_v33 = vpop.f32.mrf.mxu1 }
 0x149   : > { %v665_v34 = vadd.f32 %v664_v33, %v551_v32 }
 0x14b   : > { %v777_v35 = vpop.f32.mrf.mxu2  ;;  %1165 = vst [vmem:[%s1776_s17 + $0x100] sm:$0xff] %v665_v34 }
 0x14c   : > { %v890_v36 = vpop.f32.mrf.mxu3 }
 0x14d   : > { %v891_v37 = vadd.f32 %v890_v36, %v777_v35 }
 0x14f   : > { %1166 = vst [vmem:[%s1776_s17 + $0x108] sm:$0xff] %v891_v37  ;;  %v554_v38 = vpop.f32.mrf.mxu0 }
 0x150   : > { %v667_v39 = vpop.f32.mrf.mxu1 }
 0x151   : > { %v668_v40 = vadd.f32 %v667_v39, %v554_v38 }
 0x153   : > { %v780_v41 = vpop.f32.mrf.mxu2  ;;  %1167 = vst [vmem:[%s1776_s17 + $0x110] sm:$0xff] %v668_v40 }
 0x154   : > { %v893_v42 = vpop.f32.mrf.mxu3 }
 0x155   : > { %v894_v43 = vadd.f32 %v893_v42, %v780_v41 }
 0x157   : > { %1168 = vst [vmem:[%s1776_s17 + $0x118] sm:$0xff] %v894_v43  ;;  %v557_v44 = vpop.f32.mrf.mxu0 }
 0x158   : > { %v670_v45 = vpop.f32.mrf.mxu1 }
 0x159   : > { %v671_v46 = vadd.f32 %v670_v45, %v557_v44 }
 0x15b   : > { %v783_v47 = vpop.f32.mrf.mxu2  ;;  %1169 = vst [vmem:[%s1776_s17 + $0x120] sm:$0xff] %v671_v46 }
 0x15c   : > { %v896_v48 = vpop.f32.mrf.mxu3 }
 0x15d   : > { %v897_v49 = vadd.f32 %v896_v48, %v783_v47 }
 0x15f   : > { %1170 = vst [vmem:[%s1776_s17 + $0x128] sm:$0xff] %v897_v49  ;;  %v560_v50 = vpop.f32.mrf.mxu0 }
 0x160   : > { %v673_v51 = vpop.f32.mrf.mxu1 }
 0x161   : > { %v674_v52 = vadd.f32 %v673_v51, %v560_v50 }
 0x163   : > { %v786_v53 = vpop.f32.mrf.mxu2  ;;  %1171 = vst [vmem:[%s1776_s17 + $0x130] sm:$0xff] %v674_v52 }
 0x164   : > { %v899_v54 = vpop.f32.mrf.mxu3 }
 0x165   : > { %v900_v55 = vadd.f32 %v899_v54, %v786_v53 }
 0x167   : > { %1172 = vst [vmem:[%s1776_s17 + $0x138] sm:$0xff] %v900_v55  ;;  %v563_v56 = vpop.f32.mrf.mxu0 }
 0x168   : > { %v676_v57 = vpop.f32.mrf.mxu1 }
 0x169   : > { %v677_v58 = vadd.f32 %v676_v57, %v563_v56 }
 0x16b   : > { %v789_v59 = vpop.f32.mrf.mxu2  ;;  %1173 = vst [vmem:[%s1776_s17 + $0x140] sm:$0xff] %v677_v58 }
 0x16c   : > { %v902_v60 = vpop.f32.mrf.mxu3 }
 0x16d   : > { %v903_v61 = vadd.f32 %v902_v60, %v789_v59 }
 0x16f   : > { %1174 = vst [vmem:[%s1776_s17 + $0x148] sm:$0xff] %v903_v61  ;;  %v566_v62 = vpop.f32.mrf.mxu0 }
 0x170   : > { %v679_v63 = vpop.f32.mrf.mxu1 }
 0x171   : > { %v680_v0 = vadd.f32 %v679_v63, %v566_v62 }
 0x173   : > { %v792_v1 = vpop.f32.mrf.mxu2  ;;  %1175 = vst [vmem:[%s1776_s17 + $0x150] sm:$0xff] %v680_v0 }
 0x174   : > { %v905_v2 = vpop.f32.mrf.mxu3 }
 0x175   : > { %v906_v3 = vadd.f32 %v905_v2, %v792_v1 }
 0x177   : > { %1176 = vst [vmem:[%s1776_s17 + $0x158] sm:$0xff] %v906_v3  ;;  %v569_v4 = vpop.f32.mrf.mxu0 }
 0x178   : > { %v682_v5 = vpop.f32.mrf.mxu1 }
 0x179   : > { %v683_v6 = vadd.f32 %v682_v5, %v569_v4 }
 0x17b   : > { %v795_v7 = vpop.f32.mrf.mxu2  ;;  %1177 = vst [vmem:[%s1776_s17 + $0x160] sm:$0xff] %v683_v6 }
 0x17c   : > { %v908_v8 = vpop.f32.mrf.mxu3 }
 0x17d   : > { %v909_v9 = vadd.f32 %v908_v8, %v795_v7 }
 0x17f   : > { %1178 = vst [vmem:[%s1776_s17 + $0x168] sm:$0xff] %v909_v9  ;;  %v572_v10 = vpop.f32.mrf.mxu0 }
 0x180   : > { %v685_v11 = vpop.f32.mrf.mxu1 }
 0x181   : > { %v686_v12 = vadd.f32 %v685_v11, %v572_v10 }
 0x183   : > { %v798_v13 = vpop.f32.mrf.mxu2  ;;  %1179 = vst [vmem:[%s1776_s17 + $0x170] sm:$0xff] %v686_v12 }
 0x184   : > { %v911_v14 = vpop.f32.mrf.mxu3 }
 0x185   : > { %v912_v15 = vadd.f32 %v911_v14, %v798_v13 }
 0x187   : > { %1180 = vst [vmem:[%s1776_s17 + $0x178] sm:$0xff] %v912_v15  ;;  %v575_v16 = vpop.f32.mrf.mxu0 }
 0x188   : > { %v688_v17 = vpop.f32.mrf.mxu1 }
 0x189   : > { %v689_v18 = vadd.f32 %v688_v17, %v575_v16 }
 0x18b   : > { %v801_v19 = vpop.f32.mrf.mxu2  ;;  %1181 = vst [vmem:[%s1776_s17 + $0x180] sm:$0xff] %v689_v18 }
 0x18c   : > { %v914_v20 = vpop.f32.mrf.mxu3 }
 0x18d   : > { %v915_v21 = vadd.f32 %v914_v20, %v801_v19 }
 0x18f   : > { %1182 = vst [vmem:[%s1776_s17 + $0x188] sm:$0xff] %v915_v21  ;;  %v578_v22 = vpop.f32.mrf.mxu0 }
 0x190   : > { %v691_v23 = vpop.f32.mrf.mxu1 }
 0x191   : > { %v692_v24 = vadd.f32 %v691_v23, %v578_v22 }
 0x193   : > { %v804_v25 = vpop.f32.mrf.mxu2  ;;  %1183 = vst [vmem:[%s1776_s17 + $0x190] sm:$0xff] %v692_v24 }
 0x194   : > { %v917_v26 = vpop.f32.mrf.mxu3 }
 0x195   : > { %v918_v27 = vadd.f32 %v917_v26, %v804_v25 }
 0x197   : > { %1184 = vst [vmem:[%s1776_s17 + $0x198] sm:$0xff] %v918_v27  ;;  %v581_v28 = vpop.f32.mrf.mxu0 }
 0x198   : > { %v694_v29 = vpop.f32.mrf.mxu1 }
 0x199   : > { %v695_v30 = vadd.f32 %v694_v29, %v581_v28 }
 0x19b   : > { %v807_v31 = vpop.f32.mrf.mxu2  ;;  %1185 = vst [vmem:[%s1776_s17 + $0x1a0] sm:$0xff] %v695_v30 }
 0x19c   : > { %v920_v32 = vpop.f32.mrf.mxu3 }
 0x19d   : > { %v921_v33 = vadd.f32 %v920_v32, %v807_v31 }
 0x19f   : > { %1186 = vst [vmem:[%s1776_s17 + $0x1a8] sm:$0xff] %v921_v33  ;;  %v584_v34 = vpop.f32.mrf.mxu0 }
 0x1a0   : > { %v697_v35 = vpop.f32.mrf.mxu1 }
 0x1a1   : > { %v698_v36 = vadd.f32 %v697_v35, %v584_v34 }
 0x1a3   : > { %v810_v37 = vpop.f32.mrf.mxu2  ;;  %1187 = vst [vmem:[%s1776_s17 + $0x1b0] sm:$0xff] %v698_v36 }
 0x1a4   : > { %v923_v38 = vpop.f32.mrf.mxu3 }
 0x1a5   : > { %v924_v39 = vadd.f32 %v923_v38, %v810_v37 }
 0x1a7   : > { %1188 = vst [vmem:[%s1776_s17 + $0x1b8] sm:$0xff] %v924_v39  ;;  %v587_v40 = vpop.f32.mrf.mxu0 }
 0x1a8   : > { %v700_v41 = vpop.f32.mrf.mxu1 }
 0x1a9   : > { %v701_v42 = vadd.f32 %v700_v41, %v587_v40 }
 0x1ab   : > { %v813_v43 = vpop.f32.mrf.mxu2  ;;  %1189 = vst [vmem:[%s1776_s17 + $0x1c0] sm:$0xff] %v701_v42 }
 0x1ac   : > { %v926_v44 = vpop.f32.mrf.mxu3 }
 0x1ad   : > { %v927_v45 = vadd.f32 %v926_v44, %v813_v43 }
 0x1af   : > { %1190 = vst [vmem:[%s1776_s17 + $0x1c8] sm:$0xff] %v927_v45  ;;  %v590_v46 = vpop.f32.mrf.mxu0 }
 0x1b0   : > { %v703_v47 = vpop.f32.mrf.mxu1 }
 0x1b1   : > { %v704_v48 = vadd.f32 %v703_v47, %v590_v46 }
 0x1b3   : > { %v816_v49 = vpop.f32.mrf.mxu2  ;;  %1191 = vst [vmem:[%s1776_s17 + $0x1d0] sm:$0xff] %v704_v48 }
 0x1b4   : > { %v929_v50 = vpop.f32.mrf.mxu3 }
 0x1b5   : > { %v930_v51 = vadd.f32 %v929_v50, %v816_v49 }
 0x1b7   : > { %1192 = vst [vmem:[%s1776_s17 + $0x1d8] sm:$0xff] %v930_v51  ;;  %v593_v52 = vpop.f32.mrf.mxu0 }
 0x1b8   : > { %v706_v53 = vpop.f32.mrf.mxu1 }
 0x1b9   : > { %v707_v54 = vadd.f32 %v706_v53, %v593_v52 }
 0x1bb   : > { %v819_v55 = vpop.f32.mrf.mxu2  ;;  %1193 = vst [vmem:[%s1776_s17 + $0x1e0] sm:$0xff] %v707_v54 }
 0x1bc   : > { %v932_v56 = vpop.f32.mrf.mxu3 }
 0x1bd   : > { %v933_v57 = vadd.f32 %v932_v56, %v819_v55 }
 0x1bf   : > { %1194 = vst [vmem:[%s1776_s17 + $0x1e8] sm:$0xff] %v933_v57  ;;  %v596_v58 = vpop.f32.mrf.mxu0 }
 0x1c0   : > { %v709_v59 = vpop.f32.mrf.mxu1 }
 0x1c1   : > { %v710_v60 = vadd.f32 %v709_v59, %v596_v58 }
 0x1c3   : > { %v822_v61 = vpop.f32.mrf.mxu2  ;;  %1195 = vst [vmem:[%s1776_s17 + $0x1f0] sm:$0xff] %v710_v60 }
 0x1c4   : > { %v935_v62 = vpop.f32.mrf.mxu3 }
 0x1c5   : > { %v936_v63 = vadd.f32 %v935_v62, %v822_v61 }
 0x1c7   : > { %1196 = vst [vmem:[%s1776_s17 + $0x1f8] sm:$0xff] %v936_v63 }
 0x1c8   : > { %1508 = shalt.err (!%p1505_p12)
}
 0x1c9   : > { %s1573_s30 = smov 256   ;;  %s1574_s3 = smov 768  }
 0x1ca   : > { %s1575_s6 = smov 16  }
 0x1cb   : > { %1348 = dma.vmem_to_hbm [thread:$0]  (%p1672_p3), %s1214_s15, 8192, %s1216_s16, %s1198_s12, %s1573_s30, %s1574_s3, %s1575_s6  }
 0x1cc PF: > { %p1365_p13 = scmp.ge.s32.totalorder %s1567_s14, 2  ;;  %s1230_s27 = sand.u32 1, %s1547_s9  }
 0x1cd   : > { %s1231_s17 = scalar_lea.sflag [#allocation5], %s1230_s27 }
 0x1ce   : > { %p1359_p0 = pnand %p1365_p13, %p1640_p6 }
 0x1d0   : > { %p1360_p5 = pneg %p1359_p0 }
 0x1d2   : > { %1542 = dma.done.wait (%p1360_p5), %s1231_s17, 8192  }
 0x1d3   : > { %1544 = vsyncadd (%p1360_p5), %s1231_s17, 4294959104  ;;  %s19_s14 = sadd.s32 1, %s1567_s14   ;;  %s1892_s9 = smov %s1551_s10 }
 0x1d4   : > { %p16_p7 = scmp.ge.s32.totalorder %s19_s14, 5   ;;  %s1893_s10 = smov %s1555_s11 }
 0x1d5   : > { %s1894_s11 = smov %s1681_s8  ;;  %s1895_s12 = smov %s1563_s13 }
 0x1d6   : > { %s1896_s13 = smov %s1898_s29  ;;  %18 = sbr.rel (!%p16_p7) target bundleno = 7 (0x7), region = 87 }
 0x1db   :  { %1237 = vsyncpa [#allocation4], 1 }
 0x1dc   :  { %1239 = vsyncpa [#allocation4 + $0x1], 1 }
 0x1dd   :  { %1240 = vsyncpa [#allocation7], 1 }
 0x1de   :  { %1242 = vsyncpa [#allocation7 + $0x1], 1 }
 0x1df   :  { %1243 = vsyncpa [#allocation5], 1 }
 0x1e0   :  { %1245 = vsyncpa [#allocation5 + $0x1], 1 }

</bundles_post_ra>
